<compile_context>
chip_gen: v5e
topology: v5e:2x2
jax: 0.10.0
libtpu: 0.0.40
codegen_flags: <defaults>
</compile_context>

<pallas_src>
import jax
import jax.numpy as jnp
from jax.experimental import pallas as pl
from jax.experimental.pallas import tpu as pltpu


def _mlp_kernel(xt_ref, w1_ref, b1_ref, w2_ref, b2_ref, o_ref):
    """One batch tile, batch-in-lanes: (D_in, TILE_B) -> lane-dense (1, TILE_B) row."""
    # Layer 1 on the MXU: (H, D_in) bf16 @ (D_in, TILE_B) bf16 -> (H, TILE_B) f32.
    h = jnp.dot(w1_ref[...], xt_ref[...], preferred_element_type=jnp.float32)
    h = jnp.maximum(h + b1_ref[...], 0.0)            # (H,1) bias broadcast + ReLU, f32 VPU

    # Layer 2 on the MXU: explicit bf16 operands, f32 accumulation.
    # (1, H) bf16 @ (H, TILE_B) bf16 -> (1, TILE_B) f32, already lane-dense.
    z = jnp.dot(w2_ref[...], h.astype(jnp.bfloat16),
                preferred_element_type=jnp.float32)
    z = z + b2_ref[0, 0]                              # scalar bias from SMEM
    o_ref[...] = jax.nn.sigmoid(z)                    # EUP exp path, f32


def neural_net_forward(x, w1, b1, w2, b2):
    """Fused MLP forward.

    x : (B, D_in) f32   (PyTorch activation layout)
    w1: (H, D_in) bf16  (nn.Linear(input, hidden).weight layout, pre-cast to bf16)
    b1: (H, 1)    f32
    w2: (1, H)    bf16  (nn.Linear(hidden, 1).weight layout, pre-cast to bf16)
    b2: (1, 1)    f32
    returns (B, 1) f32
    """
    B, d_in = x.shape
    hidden, d_in_w = w1.shape
    # Guard the caller contract (easy silent-mismatch trap otherwise).
    assert d_in_w == d_in, "w1 must be (hidden, input) — PyTorch layout"
    assert w1.dtype == jnp.bfloat16 and w2.dtype == jnp.bfloat16
    assert b1.shape == (hidden, 1) and w2.shape == (1, hidden) and b2.shape == (1, 1)

    # Batch-in-lanes: feed x feature-major and bf16 (layer 1 is bf16 on the MXU anyway,
    # and this halves the dominant HBM stream).  Single fused transpose+cast upstream.
    x_t = x.T.astype(jnp.bfloat16)                    # (D_in, B)

    # Tile choice: 2 lane-aligned batch tiles when possible so dimension_semantics
    # "parallel" shards them across both TensorCores on v7x; otherwise one full tile
    # (optimal on single-TC v5e/v6e).  Per-tile VMEM is tiny in both cases.
    if B % 256 == 0:
        num_tiles, tb = 2, B // 2
    else:
        num_tiles, tb = 1, B

    in_specs = [
        # Activations streamed tile-by-tile (HBM->VMEM DMA overlaps compute).
        pl.BlockSpec((d_in, tb), lambda i: (0, i)),
        # Weights / first bias: constant block index -> fetched once, resident in VMEM.
        pl.BlockSpec((hidden, d_in), lambda i: (0, 0)),
        pl.BlockSpec((hidden, 1), lambda i: (0, 0)),
        pl.BlockSpec((1, hidden), lambda i: (0, 0)),
        # Scalar second-layer bias lives in SMEM.
        pl.BlockSpec(memory_space=pltpu.MemorySpace.SMEM),
    ]
    # Single (1, B) output row; each grid step writes a distinct lane-aligned segment.
    out_specs = pl.BlockSpec((1, tb), lambda i: (0, i))
    out_shape = jax.ShapeDtypeStruct((1, num_tiles * tb), jnp.float32)

    y = pl.pallas_call(
        _mlp_kernel,
        grid=(num_tiles,),
        in_specs=in_specs,
        out_specs=out_specs,
        out_shape=out_shape,
        compiler_params=pltpu.CompilerParams(
            # Batch tiles are independent -> shard across both TCs on v7x.
            dimension_semantics=("parallel",),
        ),
    )(x_t, w1, b1, w2, b2)

    # (1, B) row -> (B, 1) column, matching the module's output shape.
    return y.reshape(B, 1)


if __name__ == "__main__":
    # Shapes consistent with the module (Linear(in, hid) -> Linear(hid, 1)); B is a
    # multiple of 256 so the two-tile / dual-TensorCore path is exercised.
    batch, input_size, hidden_size = 1024, 16, 32

    key = jax.random.PRNGKey(0)
    kx, k1, kb1, k2, kb2 = jax.random.split(key, 5)

    x = jax.random.normal(kx, (batch, input_size), dtype=jnp.float32)

    # Deterministic init (uniform like PyTorch's default, fixed seed), PyTorch layouts.
    bound1 = 1.0 / (input_size ** 0.5)
    w1 = jax.random.uniform(k1, (hidden_size, input_size), jnp.float32,
                            -bound1, bound1).astype(jnp.bfloat16)
    b1 = jax.random.uniform(kb1, (hidden_size, 1), jnp.float32, -bound1, bound1)
    bound2 = 1.0 / (hidden_size ** 0.5)
    w2 = jax.random.uniform(k2, (1, hidden_size), jnp.float32,
                            -bound2, bound2).astype(jnp.bfloat16)
    b2 = jax.random.uniform(kb2, (1, 1), jnp.float32, -bound2, bound2)

    out = neural_net_forward(x, w1, b1, w2, b2)
    jax.block_until_ready(out)

    # Pure-JAX reference with the same bf16 rounding of every matmul operand.
    xb = x.astype(jnp.bfloat16).astype(jnp.float32)
    w1f = w1.astype(jnp.float32)
    w2f = w2.astype(jnp.float32)
    h_ref = jnp.maximum(xb @ w1f.T + b1.T, 0.0)
    h_bf = h_ref.astype(jnp.bfloat16).astype(jnp.float32)
    ref = jax.nn.sigmoid(h_bf @ w2f.T + b2[0, 0])

    assert out.shape == (batch, 1)
    assert jnp.allclose(out, ref, atol=1e-3), "mismatch vs reference"

    print("KERNEL_OK")
</pallas_src>

<mosaic_0001>
module attributes {stable_mosaic.version = 11 : i64} {
  func.func @_mlp_kernel(%arg0: i32, %arg1: memref<16x512xbf16, #tpu.memory_space<vmem>>, %arg2: memref<32x16xbf16, #tpu.memory_space<vmem>>, %arg3: memref<32x1xf32, #tpu.memory_space<vmem>>, %arg4: memref<1x32xbf16, #tpu.memory_space<vmem>>, %arg5: memref<1x1xf32, #tpu.memory_space<smem>>, %arg6: memref<1x512xf32, #tpu.memory_space<vmem>>) attributes {dimension_semantics = [#tpu.dimension_semantics<parallel>], iteration_bounds = array<i64: 2>, scalar_prefetch = 0 : i64, scratch_operands = 0 : i64, tpu.core_type = #tpu.core_type<tc>, window_params = [{transform_indices = @transform_0, window_bounds = array<i64: 16, 512>}, {pipeline_mode = #tpu.pipeline_mode<synchronous>, transform_indices = @transform_1, window_bounds = array<i64: 32, 16>}, {pipeline_mode = #tpu.pipeline_mode<synchronous>, transform_indices = @transform_2, window_bounds = array<i64: 32, 1>}, {pipeline_mode = #tpu.pipeline_mode<synchronous>, transform_indices = @transform_3, window_bounds = array<i64: 1, 32>}, {transform_indices = @transform_4, window_bounds = array<i64: 1, 1>}, {transform_indices = @transform_5, window_bounds = array<i64: 1, 512>}]} {
    %c0 = arith.constant 0 : index
    %c0_0 = arith.constant 0 : index
    %0 = vector.load %arg2[%c0, %c0_0] : memref<32x16xbf16, #tpu.memory_space<vmem>>, vector<32x16xbf16>
    %c0_1 = arith.constant 0 : index
    %c0_2 = arith.constant 0 : index
    %1 = vector.load %arg1[%c0_1, %c0_2] : memref<16x512xbf16, #tpu.memory_space<vmem>>, vector<16x512xbf16>
    %cst = arith.constant dense<0.000000e+00> : vector<32x512xf32>
    %2 = tpu.matmul %0, %1, %cst {dimension_numbers = #tpu.dot_dimension_numbers<[1], [0], [0], [1], [0, 0, 1, 1], [], []>} : vector<32x16xbf16>, vector<16x512xbf16>, vector<32x512xf32> -> vector<32x512xf32>
    %c0_3 = arith.constant 0 : index
    %c0_4 = arith.constant 0 : index
    %3 = vector.load %arg3[%c0_3, %c0_4] : memref<32x1xf32, #tpu.memory_space<vmem>>, vector<32x1xf32>
    %4 = vector.broadcast %3 : vector<32x1xf32> to vector<32x512xf32>
    %5 = arith.addf %2, %4 : vector<32x512xf32>
    %cst_5 = arith.constant 0.000000e+00 : f32
    %6 = vector.broadcast %cst_5 : f32 to vector<32x512xf32>
    %7 = arith.maximumf %5, %6 : vector<32x512xf32>
    %c0_6 = arith.constant 0 : index
    %c0_7 = arith.constant 0 : index
    %8 = vector.load %arg4[%c0_6, %c0_7] : memref<1x32xbf16, #tpu.memory_space<vmem>>, vector<1x32xbf16>
    %9 = arith.truncf %7 : vector<32x512xf32> to vector<32x512xbf16>
    %cst_8 = arith.constant dense<0.000000e+00> : vector<1x512xf32>
    %10 = tpu.matmul %8, %9, %cst_8 {dimension_numbers = #tpu.dot_dimension_numbers<[1], [0], [0], [1], [0, 0, 1, 1], [], []>} : vector<1x32xbf16>, vector<32x512xbf16>, vector<1x512xf32> -> vector<1x512xf32>
    %c0_9 = arith.constant 0 : index
    %c0_10 = arith.constant 0 : index
    %11 = memref.load %arg5[%c0_9, %c0_10] : memref<1x1xf32, #tpu.memory_space<smem>>
    %12 = vector.broadcast %11 : f32 to vector<1x512xf32>
    %13 = arith.addf %10, %12 : vector<1x512xf32>
    %14 = arith.negf %13 : vector<1x512xf32>
    %15 = math.exp %14 : vector<1x512xf32>
    %cst_11 = arith.constant 1.000000e+00 : f32
    %16 = vector.broadcast %cst_11 : f32 to vector<1x512xf32>
    %17 = arith.addf %16, %15 : vector<1x512xf32>
    %18 = arith.divf %16, %17 : vector<1x512xf32>
    %c0_12 = arith.constant 0 : index
    %c0_13 = arith.constant 0 : index
    %19 = vector.load %arg6[%c0_12, %c0_13] : memref<1x512xf32, #tpu.memory_space<vmem>>, vector<1x512xf32>
    tpu.vector_store %arg6[%c0_12, %c0_13], %18 {strides = array<i32>} : memref<1x512xf32, #tpu.memory_space<vmem>>, vector<1x512xf32>,
    return
  }
  func.func @transform_0(%arg0: i32) -> (i32, i32) {
    %c0_i32 = arith.constant 0 : i32
    %c0_i32_0 = arith.constant 0 : i32
    return %c0_i32, %arg0 : i32, i32
  }
  func.func @transform_1(%arg0: i32) -> (i32, i32) {
    %c0_i32 = arith.constant 0 : i32
    %c0_i32_0 = arith.constant 0 : i32
    %c0_i32_1 = arith.constant 0 : i32
    return %c0_i32, %c0_i32_0 : i32, i32
  }
  func.func @transform_2(%arg0: i32) -> (i32, i32) {
    %c0_i32 = arith.constant 0 : i32
    %c0_i32_0 = arith.constant 0 : i32
    %c0_i32_1 = arith.constant 0 : i32
    return %c0_i32, %c0_i32_0 : i32, i32
  }
  func.func @transform_3(%arg0: i32) -> (i32, i32) {
    %c0_i32 = arith.constant 0 : i32
    %c0_i32_0 = arith.constant 0 : i32
    %c0_i32_1 = arith.constant 0 : i32
    return %c0_i32, %c0_i32_0 : i32, i32
  }
  func.func @transform_4(%arg0: i32) -> (i32, i32) {
    %c0_i32 = arith.constant 0 : i32
    %c0_i32_0 = arith.constant 0 : i32
    %c0_i32_1 = arith.constant 0 : i32
    return %c0_i32, %c0_i32_0 : i32, i32
  }
  func.func @transform_5(%arg0: i32) -> (i32, i32) {
    %c0_i32 = arith.constant 0 : i32
    %c0_i32_0 = arith.constant 0 : i32
    return %c0_i32, %arg0 : i32, i32
  }
}

</mosaic_0001>

<bundles_post_ra>
// kernel: tpu_custom_call.1
= control target key start
LH: loop header
LB: loop body
LE: loop exit
PB: predicated region body
PF: predicated region fallthrough
CT: control target
= control target key end

     0   :  { %s1120_s0 = inlined_call_operand.hbm [shape: bf16[16,1024], index: 0, kind: input, shape index: {}]   ;;  %s1121_s1 = inlined_call_operand.vmem [shape: bf16[32,16], index: 1, kind: input, shape index: {}]   ;;  %s1122_s2 = inlined_call_operand.vmem [shape: f32[32,1], index: 2, kind: input, shape index: {}]   ;;  %s1123_s3 = inlined_call_operand.vmem [shape: bf16[1,32], index: 3, kind: input, shape index: {}]   ;;  %s1124_s4 = inlined_call_operand.<no memory space> [shape: f32[1,1], index: 4, kind: input, shape index: {}]   ;;  %s1125_s5 = inlined_call_operand.hbm [shape: f32[1,1024], index: 5, kind: output, shape index: {}]  }
   0x1   :  { %10 = sst [smem:[#allocation2]] %s1124_s4 }
   0x2   :  { %11 = vsyncpa [#allocation4], 0 }
   0x3   :  { %13 = vsyncpa [#allocation4 + $0x1], 0 }
   0x4   :  { %14 = vsyncpa [#allocation5], 0 }
   0x5   :  { %16 = vsyncpa [#allocation5 + $0x1], 0  ;;  %s921_s20 = smov 0   ;;  %s923_s21 = smov 0  }
   0x6   :  { %s925_s22 = smov 0   ;;  %s927_s23 = smov 0  }
   0x7 LB: > { %s942_s4 = sadd.s32 4294967295, %s882_s23   ;;  %s658_s24 = sadd.s32 4294967294, %s882_s23   ;;  %s882_s23 = sphi %s927_s23, %s1142_s23   ;;  %s878_s22 = sphi %s925_s22, %s1141_s22   ;;  %s874_s21 = sphi %s923_s21, %s1140_s21   ;;  %s870_s20 = sphi %s921_s20, %s1139_s20  }
   0x8   : > { %s946_s25 = sadd.s32 1, %s882_s23   ;;  %s29_s26 = sadd.s32 1, %s878_s22 }
   0x9   : > { %s26_s27 = ssub.s32 %s882_s23, %s946_s25  ;;  %p36_p0 = scmp.ne.s32.totalorder %s878_s22, %s874_s21 }
   0xa   : > { %p27_p1 = scmp.eq.s32.totalorder %s26_s27, 0  ;;  %p37_p2 = scmp.eq.s32.totalorder %s882_s23, 0 }
   0xb   : > { %p42_p3 = scmp.ne.s32.totalorder %s874_s21, %s870_s20  ;;  %p43_p4 = scmp.eq.s32.totalorder %s942_s4, 0 }
   0xc   : > { %s958_s28 = scalar_select %p27_p1, %s878_s22, %s29_s26  }
   0xd   : > { %p960_p5 = por %p37_p2, %p36_p0  ;;  %p964_p6 = por %p43_p4, %p42_p3 }
   0xe   : > { %p150_p7 = scmp.eq.s32.totalorder %s942_s4, 1  ;;  %p156_p8 = scmp.eq.s32.totalorder %s658_s24, 1 }
   0xf   : > { %p660_p9 = scmp.ge.s32.totalorder %s882_s23, 2  ;;  %p730_p10 = scmp.lt.s32.totalorder %s882_s23, 2 }
  0x10   : > { %p971_p11 = por %p150_p7, %p36_p0  ;;  %p975_p12 = por %p156_p8, %p42_p3 }
  0x11   : > { %s188_s8 = sand.u32 1, %s878_s22   ;;  %s711_s9 = sshll.u32 %s882_s23, 4 }
  0x12   : > { %s661_s10 = sshll.u32 %s188_s8, 5  ;;  %s197_s13 = scalar_lea.hbm %s1120_s0, %s711_s9 }
  0x13   : > { %s198_s14 = sshll.u32 %s197_s13, 4  ;;  %s192_s15 = scalar_lea.vmem [#allocation3], %s661_s10  ;;  %s199_s14 = int_to_ptr.hbm [resolvable:$true] %s198_s14 }
  0x14   : > { %s200_s16 = sshll.u32 %s192_s15, 4  ;;  %p986_p13 = pnand %p730_p10, %p960_p5  ;;  %s201_s16 = int_to_ptr.vmem [resolvable:$true] %s200_s16 }
  0x15   : > { %p664_p0 = scmp.ge.s32.totalorder %s882_s23, 1  ;;  %s189_s18 = scalar_lea.sflag [#allocation4], %s188_s8 }
  0x16   : > { %s786_s19 = sshra.s32 %s199_s14, 4  ;;  %p790_p2 = pneg %p986_p13  ;;  %s787_s19 = int_to_ptr.hbm [resolvable:$true] %s786_s19 }
  0x17   : > { %s788_s24 = scalar_lea.hbm %s787_s19, 32  ;;  %s793_s9 = scalar_lea.hbm %s1120_s0, 64 }
  0x18   : > { %p789_p1 = scmp.ne.s32.totalorder %s787_s19, %s788_s24  ;;  %p794_p5 = scmp.lt.s32.totalorder %s787_s19, %s1120_s0 }
  0x19   : > { %p795_p7 = scmp.lt.s32.totalorder %s793_s9, %s788_s24 }
  0x1a   : > { %p791_p3 = pnand %p790_p2, %p789_p1 }
  0x1b   : > { %p796_p8 = por %p795_p7, %p794_p5 }
  0x1c   : > { %p792_p4 = pneg %p791_p3 }
  0x1e   : > { %p797_p10 = pnand %p796_p8, %p792_p4 }
  0x20   : > { %800 = shalt.err (!%p797_p10)
}
  0x21   : > { %s884_s8 = smov 512   ;;  %s885_s11 = smov 256  }
  0x22   : > { %s886_s12 = smov 16   ;;  %p208_p1 = scmp.lt.s32.totalorder %s882_s23, 3 }
  0x23   : > { %725 = dma.hbm_to_vmem [thread:$0]  (!%p986_p13), %s199_s14, 512, %s201_s16, %s189_s18, %s884_s8, %s885_s11, %s886_s12  }
  0x24   : > { %p209_p2 = pnand %p664_p0, %p208_p1 }
  0x25   : > { %s1005_s13 = sand.u32 (!%p209_p2), 1, %s874_s21  }
  0x26   : > { %212 = sbr.rel (%p209_p2) target bundleno = 391 (0x187), region = 40  ;;  %s665_s15 = sshll.u32 (!%p209_p2), %s1005_s13, 5 }
  0x27   : > { %s215_s19 = scalar_lea.sflag (!%p209_p2), [#allocation4], %s1005_s13  ;;  %s218_s24 = scalar_lea.vmem (!%p209_p2), [#allocation3], %s665_s15 }
  0x2b   : > { %861 = dma.done.wait (%p964_p6), %s215_s19, 512  }
  0x2c   : > { %863 = vsyncadd (%p964_p6), %s215_s19, 4294966784  ;;  %v887_v0 = vmov 0   ;;  %v677_v1 = vld [vmem:[%s218_s24] sm:$0xf]  ;;  %v716_v2 = vld [vmem:[%s218_s24 + $0xc] sm:$0xf0] }
  0x2d   : > { %769 = vset.pattern.permute.xlu1 %v887_v0  ;;  %768 = vset.pattern.permute.xlu0 %v887_v0  ;;  %v714_v3 = vld [vmem:[%s218_s24 + $0x4] sm:$0xf]  ;;  %v678_v4 = vor.u32 %v716_v2, %v677_v1  ;;  %v679_v5 = vld [vmem:[%s218_s24 + $0x10] sm:$0xf0]  ;;  %v685_v6 = vld [vmem:[%s218_s24 + $0x8] sm:$0xf] }
  0x2e   : > { %v717_v7 = vld [vmem:[%s218_s24 + $0x14] sm:$0xf0]  ;;  %v682_v8 = vor.u32 %v714_v3, %v679_v5  ;;  %v715_v10 = vld [vmem:[%s218_s24 + $0xc] sm:$0xf]  ;;  %v687_v11 = vld [vmem:[%s218_s24 + $0x18] sm:$0xf0] }
  0x2f   : > { %v686_v9 = vor.u32 %v717_v7, %v685_v6  ;;  %v712_v12 = vld [vmem:[%s1121_s1] sm:$0xff]  ;;  %325 = vmatpush.bf16.msra.mxu0 %v678_v4  ;;  %v690_v13 = vor.u32 %v715_v10, %v687_v11  ;;  %vm311_vm0 = vcmask 130048   ;;  %v259_v15 = vld [vmem:[%s1122_s2 + $0x10] sm:$0xff]  ;;  %v258_v16 = vld [vmem:[%s1122_s2 + $0x8] sm:$0xff]  ;;  %vm421_vm1 = vcmask 261120   ;;  %s419_s19 = sld [smem:[#allocation2]] }
  0x30   : > { %v257_v14 = vld [vmem:[%s1122_s2] sm:$0xff]  ;;  %344 = vmatpush.bf16.msra.mxu1 %v682_v8  ;;  %273 = vperm.xlu0 %768, %v259_v15   ;;  %v260_v17 = vld [vmem:[%s1122_s2 + $0x18] sm:$0xff]  ;;  %v713_v18 = vld [vmem:[%s1121_s1 + $0x8] sm:$0xff]  ;;  %s666_s24 = sshll.u32 %s1005_s13, 2  ;;  %s708_s14 = sshll.u32 %s942_s4, 2 }
  0x31   : > { %363 = vmatpush.bf16.msra.mxu2 %v686_v9  ;;  %382 = vmatpush.bf16.msra.mxu3 %v690_v13  ;;  %v410_v7 = vld [vmem:[%s1123_s3] sm:$0x1]  ;;  %s583_s30 = scalar_lea.hbm %s1125_s5, %s708_s14  ;;  %s245_s17 = scalar_lea.vmem [#allocation6], %s666_s24 }
  0x32   : > { %263 = vperm.xlu1 %769, %v257_v14   ;;  %691 = vmatmul.msk.bf16.vlgmr.msra.gmra.mxu0 %vm311_vm0, %v712_v12  ;;  %s585_s18 = sshll.u32 %s245_s17, 4  ;;  %s587_s26 = sshll.u32 %s583_s30, 4  ;;  %s586_s18 = int_to_ptr.vmem [resolvable:$true] %s585_s18  ;;  %s588_s26 = int_to_ptr.hbm [resolvable:$true] %s587_s26 }
  0x33   : > { %693 = vmatmul.msk.bf16.vlgmr.msra.gmra.mxu1 %vm311_vm0, %v712_v12  ;;  %s573_s27 = scalar_lea.sflag [#allocation5], %s1005_s13  ;;  %s830_s9 = sshra.s32 %s588_s26, 4  ;;  %s831_s9 = int_to_ptr.hbm [resolvable:$true] %s830_s9 }
  0x34   : > { %695 = vmatmul.msk.bf16.vlgmr.msra.gmra.mxu2 %vm311_vm0, %v712_v12  ;;  %697 = vmatmul.msk.bf16.vlgmr.msra.gmra.mxu3 %vm311_vm0, %v712_v12  ;;  %s832_s29 = scalar_lea.hbm %s831_s9, 4  ;;  %s836_s11 = scalar_lea.hbm %s1125_s5, 8 }
  0x35   : > { %p833_p6 = scmp.ne.s32.totalorder %s831_s9, %s832_s29  ;;  %p837_p3 = scmp.lt.s32.totalorder %s831_s9, %s1125_s5 }
  0x36   : > { %p838_p4 = scmp.lt.s32.totalorder %s836_s11, %s832_s29 }
  0x37   : > { %p834_p13 = pnand %p833_p6, %p971_p11 }
  0x38   : > { %278 = vperm.xlu0 %768, %v260_v17   ;;  %p839_p5 = por %p838_p4, %p837_p3 }
  0x39   : > { %p835_p0 = pneg %p834_p13 }
  0x3a   : > { %268 = vperm.xlu1 %769, %v258_v16   ;;  %v420_v16 = vstv %s419_s19 }
  0x3b   : > { %p840_p7 = pnand %p839_p5, %p835_p0 }
  0x42   : > { %692 = vmatmul.msk.bf16.gmra.mxu0 %vm311_vm0, %v713_v18 }
  0x43   : > { %694 = vmatmul.msk.bf16.gmra.mxu1 %vm311_vm0, %v713_v18 }
  0x44   : > { %696 = vmatmul.msk.bf16.gmra.mxu2 %vm311_vm0, %v713_v18  ;;  %698 = vmatmul.msk.bf16.gmra.mxu3 %vm311_vm0, %v713_v18 }
  0xa2   : > { %v274_v26 = vpop.permute.xlu0 %273 }
  0xa4   : > { %v264_v25 = vpop.permute.xlu1 %263 }
  0xaa   : > { %v279_v33 = vpop.permute.xlu0 %278 }
  0xac   : > { %v269_v31 = vpop.permute.xlu1 %268 }
  0xaf   : > { %v327_v19 = vpop.f32.mrf.mxu0 }
  0xb0   : > { %v346_v20 = vpop.f32.mrf.mxu1  ;;  %v328_v41 = vadd.f32 %v327_v19, %v264_v25 }
  0xb1   : > { %v347_v44 = vadd.f32 %v346_v20, %v264_v25 }
  0xb2   : > { %v394_v50 = vmax.f32 %v328_v41, 0.0 }
  0xb3   : > { %v395_v54 = vmax.f32 %v347_v44, 0.0 }
  0xb7   : > { %v365_v21 = vpop.f32.mrf.mxu2  ;;  %v384_v22 = vpop.f32.mrf.mxu3 }
  0xb8   : > { %v329_v23 = vpop.f32.mrf.mxu0  ;;  %v348_v24 = vpop.f32.mrf.mxu1  ;;  %v366_v0 = vadd.f32 %v365_v21, %v264_v25  ;;  %v385_v4 = vadd.f32 %v384_v22, %v264_v25 }
  0xb9   : > { %v330_v38 = vadd.f32 %v329_v23, %v269_v31  ;;  %v349_v42 = vadd.f32 %v348_v24, %v269_v31 }
  0xba   : > { %v396_v12 = vmax.f32 %v366_v0, 0.0  ;;  %v397_v13 = vmax.f32 %v385_v4, 0.0 }
  0xbb   : > { %v398_v51 = vmax.f32 %v330_v38, 0.0  ;;  %v399_v55 = vmax.f32 %v349_v42, 0.0 }
  0xbd   : > { %v411_v63 = vpack.c.bf16 %v398_v51, %v394_v50  ;;  %v412_v3 = vpack.c.bf16 %v399_v55, %v395_v54 }
  0xbf   : > { %v367_v27 = vpop.f32.mrf.mxu2  ;;  %v386_v28 = vpop.f32.mrf.mxu3 }
  0xc0   : > { %v332_v29 = vpop.f32.mrf.mxu0  ;;  %v351_v30 = vpop.f32.mrf.mxu1  ;;  %v368_v58 = vadd.f32 %v367_v27, %v269_v31  ;;  %v387_v61 = vadd.f32 %v386_v28, %v269_v31 }
  0xc1   : > { %v333_v32 = vadd.f32 %v332_v29, %v274_v26  ;;  %v352_v35 = vadd.f32 %v351_v30, %v274_v26 }
  0xc2   : > { %v400_v8 = vmax.f32 %v368_v58, 0.0  ;;  %v401_v10 = vmax.f32 %v387_v61, 0.0 }
  0xc3   : > { %v402_v45 = vmax.f32 %v333_v32, 0.0  ;;  %v403_v47 = vmax.f32 %v352_v35, 0.0 }
  0xc4   : > { %v413_v14 = vpack.c.bf16 %v400_v8, %v396_v12  ;;  %v414_v15 = vpack.c.bf16 %v401_v10, %v397_v13 }
  0xc7   : > { %v370_v34 = vpop.f32.mrf.mxu2  ;;  %v389_v36 = vpop.f32.mrf.mxu3 }
  0xc8   : > { %v334_v37 = vpop.f32.mrf.mxu0  ;;  %v353_v40 = vpop.f32.mrf.mxu1  ;;  %v371_v52 = vadd.f32 %v370_v34, %v274_v26  ;;  %v390_v56 = vadd.f32 %v389_v36, %v274_v26 }
  0xc9   : > { %v335_v39 = vadd.f32 %v334_v37, %v279_v33  ;;  %v354_v43 = vadd.f32 %v353_v40, %v279_v33 }
  0xca   : > { %v404_v1 = vmax.f32 %v371_v52, 0.0  ;;  %v405_v5 = vmax.f32 %v390_v56, 0.0 }
  0xcb   : > { %v406_v46 = vmax.f32 %v335_v39, 0.0  ;;  %v407_v48 = vmax.f32 %v354_v43, 0.0 }
  0xcd   : > { %v415_v49 = vpack.c.bf16 %v406_v46, %v402_v45  ;;  %v416_v53 = vpack.c.bf16 %v407_v48, %v403_v47 }
  0xcf   : > { %v372_v57 = vpop.f32.mrf.mxu2  ;;  %431 = vmatpush.bf16.msrb.mxu0 %v415_v49  ;;  %v391_v60 = vpop.f32.mrf.mxu3  ;;  %444 = vmatpush.bf16.msrb.mxu1 %v416_v53 }
  0xd0   : > { %v373_v59 = vadd.f32 %v372_v57, %v279_v33  ;;  %v392_v62 = vadd.f32 %v391_v60, %v279_v33 }
  0xd2   : > { %v408_v2 = vmax.f32 %v373_v59, 0.0  ;;  %v409_v6 = vmax.f32 %v392_v62, 0.0 }
  0xd3   : > { %432 = vmatpush.bf16.msrb.mxu0 %v411_v63  ;;  %445 = vmatpush.bf16.msrb.mxu1 %v412_v3 }
  0xd4   : > { %v417_v9 = vpack.c.bf16 %v408_v2, %v404_v1  ;;  %v418_v11 = vpack.c.bf16 %v409_v6, %v405_v5 }
  0xd6   : > { %457 = vmatpush.bf16.msrb.mxu2 %v417_v9  ;;  %699 = vmatmul.msk.bf16.vlgmr.msrb.gmra.mxu0 %vm421_vm1, %v410_v7 }
  0xd7   : > { %470 = vmatpush.bf16.msrb.mxu3 %v418_v11  ;;  %700 = vmatmul.msk.bf16.vlgmr.msrb.gmra.mxu1 %vm421_vm1, %v410_v7 }
  0xda   : > { %458 = vmatpush.bf16.msrb.mxu2 %v413_v14 }
  0xdb   : > { %471 = vmatpush.bf16.msrb.mxu3 %v414_v15 }
  0xdd   : > { %701 = vmatmul.msk.bf16.vlgmr.msrb.gmra.mxu2 %vm421_vm1, %v410_v7 }
  0xde   : > { %702 = vmatmul.msk.bf16.vlgmr.msrb.gmra.mxu3 %vm421_vm1, %v410_v7 }
 0x153   : > { %v434_v17 = vpop.f32.mrf.mxu0 }
 0x154   : > { %v447_v18 = vpop.f32.mrf.mxu1  ;;  %v435_v19 = vadd.f32 %v434_v17, %v420_v16 }
 0x155   : > { %v448_v20 = vadd.f32 %v447_v18, %v420_v16  ;;  %v567_v18 = vlaneseq }
 0x156   : > { %v703_v21 = vmul.f32 -1.442695, %v435_v19 }
 0x157   : > { %v704_v22 = vmul.f32 -1.442695, %v448_v20 }
 0x158   : > { %770 = vpow2.f32 %v703_v21 }
 0x159   : > { %772 = vpow2.f32 %v704_v22 }
 0x15b   : > { %v436_v23 = vpop.f32.mrf.mxu0 }
 0x15c   : > { %v449_v24 = vpop.f32.mrf.mxu1 }
 0x15e   : > { %v771_v25 = vpop.eup %770 }
 0x15f   : > { %v773_v26 = vpop.eup %772  ;;  %v1046_v29 = vadd.f32 1.0, %v771_v25 }
 0x160   : > { %v490_v27 = vadd.f32 1.0, %v773_v26  ;;  %v460_v28 = vpop.f32.mrf.mxu2 }
 0x161   : > { %v461_v30 = vadd.f32 %v460_v28, %v420_v16  ;;  %v473_v31 = vpop.f32.mrf.mxu3  ;;  %vm498_vm5 = vweird.f32 %v1046_v29  ;;  %v502_v57 = vand.u32 2147483647, %v1046_v29  ;;  %v504_v60 = vand.u32 2147483648, %v1046_v29 }
 0x162   : > { %774 = vrcp.f32 %v490_v27  ;;  %v474_v33 = vadd.f32 %v473_v31, %v420_v16  ;;  %vm513_vm2 = vweird.f32 %v490_v27  ;;  %v519_v49 = vand.u32 2147483648, %v490_v27 }
 0x163   : > { %v705_v32 = vmul.f32 -1.442695, %v461_v30  ;;  %776 = vrcp.f32 %v1046_v29  ;;  %v517_v52 = vand.u32 2147483647, %v490_v27  ;;  %vm1075_vm11 = vcmp.eq.f32.partialorder %v502_v57, 8.507059e+37 }
 0x164   : > { %v706_v34 = vmul.f32 -1.442695, %v474_v33  ;;  %v520_v61 = vor.u32 1.1754944e-38, %v519_v49  ;;  %v505_v11 = vor.u32 1.1754944e-38, %v504_v60 }
 0x165   : > { %778 = vpow2.f32 %v705_v32  ;;  %vm1062_vm8 = vcmp.eq.f32.partialorder %v517_v52, 8.507059e+37 }
 0x166   : > { %780 = vpow2.f32 %v706_v34 }
 0x168   : > { %v775_v35 = vpop.eup %774  ;;  %v462_v36 = vpop.f32.mrf.mxu2 }
 0x169   : > { %v475_v37 = vpop.f32.mrf.mxu3  ;;  %v1049_v38 = vpop.eup %776  ;;  %v509_v39 = vmul.f32 %v775_v35, %v490_v27  ;;  %vm514_vm3 = vweird.f32 %v775_v35 }
 0x16a   : > { %v494_v44 = vmul.f32 %v1049_v38, %v1046_v29  ;;  %vm1054_vm4 = vmor %vm513_vm2, %vm514_vm3  ;;  %vm499_vm6 = vweird.f32 %v1049_v38  ;;  %vm560_vm2 = vcmask 1040384   ;;  %vm562_vm3 = vcmask 1042434  }
 0x16b   : > { %v779_v40 = vpop.eup %778  ;;  %v510_v43 = vsub.f32 1.0, %v509_v39  ;;  %vm1071_vm10 = vmor %vm498_vm5, %vm499_vm6  ;;  %vm569_vm5 = vcmp.lt.s32.totalorder %v567_v18, 512 }
 0x16c   : > { %v491_v41 = vadd.f32 1.0, %v779_v40  ;;  %v781_v42 = vpop.eup %780  ;;  %v495_v47 = vsub.f32 1.0, %v494_v44 }
 0x16d   : > { %v492_v45 = vadd.f32 1.0, %v781_v42  ;;  %v511_v46 = vmul.f32 %v775_v35, %v510_v43 }
 0x16e   : > { %782 = vrcp.f32 %v491_v41  ;;  %v496_v53 = vmul.f32 %v1049_v38, %v495_v47  ;;  %v534_v58 = vand.u32 2147483648, %v491_v41  ;;  %v532_v63 = vand.u32 2147483647, %v491_v41 }
 0x16f   : > { %784 = vrcp.f32 %v492_v45  ;;  %v512_v51 = vadd.f32 %v775_v35, %v511_v46  ;;  %vm528_vm9 = vweird.f32 %v491_v41  ;;  %v549_v5 = vand.u32 2147483648, %v492_v45 }
 0x170   : > { %v497_v2 = vadd.f32 %v1049_v38, %v496_v53  ;;  %v535_v8 = vor.u32 1.1754944e-38, %v534_v58  ;;  %v547_v10 = vand.u32 2147483647, %v492_v45  ;;  %vm533_vm14 = vcmp.eq.f32.partialorder %v532_v63, 8.507059e+37 }
 0x171   : > { %v516_v3 = vsel %vm1054_vm4, %v775_v35, %v512_v51  ;;  %vm543_vm15 = vweird.f32 %v492_v45  ;;  %v550_v17 = vor.u32 1.1754944e-38, %v549_v5  ;;  %vm564_vm4 = vcmask 1041408  }
 0x172   : > { %v521_v12 = vsel %vm1062_vm8, %v520_v61, %v516_v3  ;;  %v501_v15 = vsel %vm1071_vm10, %v1049_v38, %v497_v2  ;;  %vm548_vm1 = vcmp.eq.f32.partialorder %v547_v10, 8.507059e+37 }
 0x173   : > { %v557_v20 = vrot.slane %v521_v12, 7  ;;  %v506_v22 = vsel %vm1075_vm11, %v505_v11, %v501_v15 }
 0x174   : > { %v783_v48 = vpop.eup %782 }
 0x175   : > { %v524_v50 = vmul.f32 %v783_v48, %v491_v41  ;;  %v785_v54 = vpop.eup %784  ;;  %vm529_vm7 = vweird.f32 %v783_v48  ;;  %v561_v25 = vsel %vm560_vm2, %v506_v22, %v557_v20 }
 0x176   : > { %v539_v59 = vmul.f32 %v785_v54, %v492_v45  ;;  %vm530_vm12 = vmor %vm528_vm9, %vm529_vm7  ;;  %vm544_vm13 = vweird.f32 %v785_v54 }
 0x177   : > { %v525_v56 = vsub.f32 1.0, %v524_v50  ;;  %vm545_vm0 = vmor %vm543_vm15, %vm544_vm13 }
 0x178   : > { %v540_v1 = vsub.f32 1.0, %v539_v59 }
 0x179   : > { %v526_v62 = vmul.f32 %v783_v48, %v525_v56 }
 0x17a   : > { %v541_v9 = vmul.f32 %v785_v54, %v540_v1 }
 0x17b   : > { %v527_v4 = vadd.f32 %v783_v48, %v526_v62 }
 0x17c   : > { %v542_v14 = vadd.f32 %v785_v54, %v541_v9 }
 0x17d   : > { %v531_v13 = vsel %vm530_vm12, %v783_v48, %v527_v4 }
 0x17e   : > { %v536_v16 = vsel %vm533_vm14, %v535_v8, %v531_v13  ;;  %v546_v19 = vsel %vm545_vm0, %v785_v54, %v542_v14 }
 0x17f   : > { %v558_v21 = vrot.slane %v536_v16, 6  ;;  %v551_v23 = vsel %vm548_vm1, %v550_v17, %v546_v19 }
 0x180   : > { %v559_v24 = vrot.slane %v551_v23, 5 }
 0x182   : > { %v563_v26 = vsel %vm562_vm3, %v558_v21, %v559_v24 }
 0x183   : > { %v565_v27 = vsel %vm564_vm4, %v561_v25, %v563_v26 }
 0x184   : > { %571 = vst.msk [vmem:[%s245_s17] sm:$0xf] %vm569_vm5, %v565_v27 }
 0x185   : > { %843 = shalt.err (!%p840_p7)
}
 0x186   : > { %720 = dma.vmem_to_hbm [thread:$0]  (%p971_p11), %s586_s18, 64, %s588_s26, %s573_s27  }
 0x187 PF: > { %s599_s13 = sand.u32 1, %s870_s20   ;;  %p727_p8 = pnand %p660_p9, %p975_p12 }
 0x188   : > { %s600_s19 = scalar_lea.sflag [#allocation5], %s599_s13 }
 0x189   : > { %p728_p10 = pneg %p727_p8 }
 0x18b   : > { %865 = dma.done.wait (%p728_p10), %s600_s19, 64  }
 0x18c   : > { %867 = vsyncadd (%p728_p10), %s600_s19, 4294967232  ;;  %p19_p1 = scmp.ge.s32.totalorder %s946_s25, 4   ;;  %s1139_s20 = smov %s874_s21 }
 0x18d   : > { %s1140_s21 = smov %s878_s22  ;;  %s1141_s22 = smov %s958_s28 }
 0x18e   : > { %s1142_s23 = smov %s946_s25  ;;  %21 = sbr.rel (!%p19_p1) target bundleno = 7 (0x7), region = 85 }
 0x193   :  { %606 = vsyncpa [#allocation4], 1 }
 0x194   :  { %608 = vsyncpa [#allocation4 + $0x1], 1 }
 0x195   :  { %609 = vsyncpa [#allocation5], 1 }
 0x196   :  { %611 = vsyncpa [#allocation5 + $0x1], 1 }

</bundles_post_ra>
